<compile_context>
chip_gen: v7x
topology: tpu7x:2x2x1
jax: 0.10.0
libtpu: 0.0.40
codegen_flags: <defaults>
</compile_context>

<pallas_src>
import math

import jax
import jax.numpy as jnp
from jax.experimental import pallas as pl
from jax.experimental.pallas import tpu as pltpu


def eca_kernel(w_ref, x_ref, o_ref):
    # w_ref: SMEM (k,) f32       conv1d weight (in=1, out=1, no bias)
    # x_ref: VMEM (1, C, HW)     one batch element, spatial dims collapsed
    # o_ref: VMEM (1, C, HW)
    _, C, HW = x_ref.shape
    k = w_ref.shape[0]
    pad = (k - 1) // 2

    x = x_ref[...]  # stays in the input dtype (no full-tile f32 copy)

    # ---- AdaptiveAvgPool2d(1): mean over collapsed spatial dim -> (1, C) f32 ----
    y = jnp.sum(x, axis=2, dtype=jnp.float32) * (1.0 / float(HW))

    # ---- Conv1d over the channel axis, zero padding (k-1)//2, no bias ----
    # z[0, c] = sum_j w[j] * y[0, c + j - pad], out-of-range taps are zero.
    c_idx = jax.lax.broadcasted_iota(jnp.int32, (1, C), 1)  # hoisted, reused per tap
    z = jnp.zeros((1, C), jnp.float32)
    for j in range(k):  # k is tiny and static -> fully unrolled
        shift = j - pad
        if shift == 0:
            z = z + w_ref[j] * y  # center tap: always valid, no mask
        else:
            rolled = jnp.roll(y, -shift, axis=1)  # rolled[0,c] = y[0,(c+shift)%C]
            valid = (c_idx + shift >= 0) & (c_idx + shift < C)
            z = z + w_ref[j] * jnp.where(valid, rolled, 0.0)

    # ---- sigmoid gate, broadcast over spatial dim, scale in the input dtype ----
    s = jax.nn.sigmoid(z).astype(x.dtype)  # (1, C)
    o_ref[...] = x * s[:, :, None]


def eca_forward(x, w):
    """x: (B, C, H, W) NCHW, w: (k,) Conv1d weight. Returns same shape/dtype."""
    B, C, H, W = x.shape
    HW = H * W
    x3 = x.reshape(B, C, HW)  # lane-dense layout for the kernel

    tile_bytes = C * HW * x3.dtype.itemsize
    # 2x double-buffered input + 2x output tiles, with headroom; kept well
    # under v7x's 64 MiB physical VMEM (larger slabs are fine on v5e/v6e).
    vmem_limit = int(min(64 << 20, max(16 << 20, 8 * tile_bytes)))
    # NOTE: for very large per-batch slabs (C*H*W*itemsize >> 8 MiB) one would
    # additionally split the channel axis into groups with a (k-1)//2 halo;
    # per-batch tiling is sufficient at these sizes.

    out3 = pl.pallas_call(
        eca_kernel,
        out_shape=jax.ShapeDtypeStruct((B, C, HW), x.dtype),
        grid=(B,),
        in_specs=[
            pl.BlockSpec(memory_space=pltpu.MemorySpace.SMEM),  # conv weight (k,)
            pl.BlockSpec((1, C, HW), lambda b: (b, 0, 0)),      # x, one batch/step
        ],
        out_specs=pl.BlockSpec((1, C, HW), lambda b: (b, 0, 0)),
        compiler_params=pltpu.CompilerParams(
            dimension_semantics=("parallel",),
            vmem_limit_bytes=vmem_limit,
        ),
    )(w, x3)
    return out3.reshape(B, C, H, W)


def eca_kernel_size(channels, gamma=2, b=1):
    ks = int(abs((math.log2(channels) + b) / gamma))
    return ks if ks % 2 else ks + 1


def eca_reference(x, w):
    """Pure-JAX reference mirroring the PyTorch forward."""
    B, C, H, W = x.shape
    k = w.shape[0]
    pad = (k - 1) // 2
    y = jnp.mean(x.astype(jnp.float32), axis=(2, 3))  # (B, C)
    yp = jnp.pad(y, ((0, 0), (pad, pad)))
    z = jnp.zeros((B, C), jnp.float32)
    for j in range(k):
        z = z + w[j] * yp[:, j:j + C]
    s = jax.nn.sigmoid(z)
    return (x.astype(jnp.float32) * s[:, :, None, None]).astype(x.dtype)


if __name__ == "__main__":
    B, C, H, W = 2, 16, 16, 16  # channels=16 -> kernel_size=3, H*W=256 lanes
    key = jax.random.PRNGKey(0)
    kx, kw = jax.random.split(key)

    x = jax.random.normal(kx, (B, C, H, W), dtype=jnp.float32)

    # Conv1d(1, 1, k, bias=False) weight, kaiming_uniform_(a=sqrt(5)):
    # fan_in = k, gain = sqrt(1/3), bound = gain*sqrt(3/fan_in) = 1/sqrt(k).
    k = eca_kernel_size(C)
    bound = 1.0 / math.sqrt(k)
    w = jax.random.uniform(kw, (k,), dtype=jnp.float32, minval=-bound, maxval=bound)

    out = eca_forward(x, w)
    out = jax.block_until_ready(out)

    ref = eca_reference(x, w)
    assert jnp.allclose(out, ref, atol=1e-5, rtol=1e-5), "mismatch vs reference"

    print("KERNEL_OK")
</pallas_src>

<mosaic_0001>
module attributes {stable_mosaic.version = 11 : i64} {
  func.func @eca_kernel(%arg0: i32, %arg1: memref<3xf32, #tpu.memory_space<smem>>, %arg2: memref<1x16x256xf32, #tpu.memory_space<vmem>>, %arg3: memref<1x16x256xf32, #tpu.memory_space<vmem>>) attributes {dimension_semantics = [#tpu.dimension_semantics<parallel>], iteration_bounds = array<i64: 2>, scalar_prefetch = 0 : i64, scratch_operands = 0 : i64, tpu.core_type = #tpu.core_type<tc>, window_params = [{transform_indices = @transform_0, window_bounds = array<i64: 3>}, {transform_indices = @transform_1, window_bounds = array<i64: 1, 16, 256>}, {transform_indices = @transform_2, window_bounds = array<i64: 1, 16, 256>}]} {
    %c0 = arith.constant 0 : index
    %c0_0 = arith.constant 0 : index
    %c0_1 = arith.constant 0 : index
    %0 = vector.load %arg2[%c0, %c0_0, %c0_1] : memref<1x16x256xf32, #tpu.memory_space<vmem>>, vector<1x16x256xf32>
    %cst = arith.constant dense<0.000000e+00> : vector<1x16xf32>
    %1 = vector.multi_reduction <add>, %0, %cst [2] : vector<1x16x256xf32> to vector<1x16xf32>
    %cst_2 = arith.constant 3.906250e-03 : f32
    %2 = vector.broadcast %cst_2 : f32 to vector<1x16xf32>
    %3 = arith.mulf %1, %2 : vector<1x16xf32>
    %4 = tpu.iota {dimensions = array<i32: 1>} : vector<1x16xi32>
    %cst_3 = arith.constant 0.000000e+00 : f32
    %5 = vector.broadcast %cst_3 : f32 to vector<1x16xf32>
    %6 = vector.extract_strided_slice %3 {offsets = [0, 15], sizes = [1, 1], strides = [1, 1]} : vector<1x16xf32> to vector<1x1xf32>
    %7 = vector.extract_strided_slice %3 {offsets = [0, 0], sizes = [1, 15], strides = [1, 1]} : vector<1x16xf32> to vector<1x15xf32>
    %8 = tpu.concatenate %6, %7 in 1 : vector<1x1xf32>, vector<1x15xf32> -> vector<1x16xf32>
    %c-1_i32 = arith.constant -1 : i32
    %9 = vector.broadcast %c-1_i32 : i32 to vector<1x16xi32>
    %10 = arith.addi %4, %9 : vector<1x16xi32>
    %c0_i32 = arith.constant 0 : i32
    %11 = vector.broadcast %c0_i32 : i32 to vector<1x16xi32>
    %12 = arith.cmpi sge, %10, %11 : vector<1x16xi32>
    %c-1_i32_4 = arith.constant -1 : i32
    %13 = vector.broadcast %c-1_i32_4 : i32 to vector<1x16xi32>
    %14 = arith.addi %4, %13 : vector<1x16xi32>
    %c16_i32 = arith.constant 16 : i32
    %15 = vector.broadcast %c16_i32 : i32 to vector<1x16xi32>
    %16 = arith.cmpi slt, %14, %15 : vector<1x16xi32>
    %17 = arith.andi %12, %16 : vector<1x16xi1>
    %c0_5 = arith.constant 0 : index
    %18 = memref.load %arg1[%c0_5] : memref<3xf32, #tpu.memory_space<smem>>
    %cst_6 = arith.constant 0.000000e+00 : f32
    %19 = vector.broadcast %cst_6 : f32 to vector<1x16xf32>
    %20 = arith.select %17, %8, %19 : vector<1x16xi1>, vector<1x16xf32>
    %21 = vector.broadcast %18 : f32 to vector<1x16xf32>
    %22 = arith.mulf %21, %20 : vector<1x16xf32>
    %23 = arith.addf %5, %22 : vector<1x16xf32>
    %c1 = arith.constant 1 : index
    %24 = memref.load %arg1[%c1] : memref<3xf32, #tpu.memory_space<smem>>
    %25 = vector.broadcast %24 : f32 to vector<1x16xf32>
    %26 = arith.mulf %25, %3 : vector<1x16xf32>
    %27 = arith.addf %23, %26 : vector<1x16xf32>
    %28 = vector.extract_strided_slice %3 {offsets = [0, 1], sizes = [1, 15], strides = [1, 1]} : vector<1x16xf32> to vector<1x15xf32>
    %29 = vector.extract_strided_slice %3 {offsets = [0, 0], sizes = [1, 1], strides = [1, 1]} : vector<1x16xf32> to vector<1x1xf32>
    %30 = tpu.concatenate %28, %29 in 1 : vector<1x15xf32>, vector<1x1xf32> -> vector<1x16xf32>
    %c1_i32 = arith.constant 1 : i32
    %31 = vector.broadcast %c1_i32 : i32 to vector<1x16xi32>
    %32 = arith.addi %4, %31 : vector<1x16xi32>
    %c0_i32_7 = arith.constant 0 : i32
    %33 = vector.broadcast %c0_i32_7 : i32 to vector<1x16xi32>
    %34 = arith.cmpi sge, %32, %33 : vector<1x16xi32>
    %c1_i32_8 = arith.constant 1 : i32
    %35 = vector.broadcast %c1_i32_8 : i32 to vector<1x16xi32>
    %36 = arith.addi %4, %35 : vector<1x16xi32>
    %c16_i32_9 = arith.constant 16 : i32
    %37 = vector.broadcast %c16_i32_9 : i32 to vector<1x16xi32>
    %38 = arith.cmpi slt, %36, %37 : vector<1x16xi32>
    %39 = arith.andi %34, %38 : vector<1x16xi1>
    %c2 = arith.constant 2 : index
    %40 = memref.load %arg1[%c2] : memref<3xf32, #tpu.memory_space<smem>>
    %cst_10 = arith.constant 0.000000e+00 : f32
    %41 = vector.broadcast %cst_10 : f32 to vector<1x16xf32>
    %42 = arith.select %39, %30, %41 : vector<1x16xi1>, vector<1x16xf32>
    %43 = vector.broadcast %40 : f32 to vector<1x16xf32>
    %44 = arith.mulf %43, %42 : vector<1x16xf32>
    %45 = arith.addf %27, %44 : vector<1x16xf32>
    %46 = arith.negf %45 : vector<1x16xf32>
    %47 = math.exp %46 : vector<1x16xf32>
    %cst_11 = arith.constant 1.000000e+00 : f32
    %48 = vector.broadcast %cst_11 : f32 to vector<1x16xf32>
    %49 = arith.addf %48, %47 : vector<1x16xf32>
    %50 = arith.divf %48, %49 : vector<1x16xf32>
    %51 = vector.shape_cast %50 : vector<1x16xf32> to vector<1x16x1xf32>
    %52 = vector.broadcast %51 : vector<1x16x1xf32> to vector<1x16x256xf32>
    %53 = arith.mulf %0, %52 : vector<1x16x256xf32>
    %c0_12 = arith.constant 0 : index
    %c0_13 = arith.constant 0 : index
    %c0_14 = arith.constant 0 : index
    %54 = vector.load %arg3[%c0_12, %c0_13, %c0_14] : memref<1x16x256xf32, #tpu.memory_space<vmem>>, vector<1x16x256xf32>
    tpu.vector_store %arg3[%c0_12, %c0_13, %c0_14], %53 {strides = array<i32>} : memref<1x16x256xf32, #tpu.memory_space<vmem>>, vector<1x16x256xf32>,
    return
  }
  func.func @transform_0(%arg0: i32) -> i32 {
    %c0_i32 = arith.constant 0 : i32
    %c0_i32_0 = arith.constant 0 : i32
    return %c0_i32 : i32
  }
  func.func @transform_1(%arg0: i32) -> (i32, i32, i32) {
    %c0_i32 = arith.constant 0 : i32
    %c0_i32_0 = arith.constant 0 : i32
    %c0_i32_1 = arith.constant 0 : i32
    return %arg0, %c0_i32, %c0_i32_0 : i32, i32, i32
  }
  func.func @transform_2(%arg0: i32) -> (i32, i32, i32) {
    %c0_i32 = arith.constant 0 : i32
    %c0_i32_0 = arith.constant 0 : i32
    %c0_i32_1 = arith.constant 0 : i32
    return %arg0, %c0_i32, %c0_i32_0 : i32, i32, i32
  }
}

</mosaic_0001>

<bundles_post_ra>
// kernel: tpu_custom_call.1
= control target key start
LH: loop header
LB: loop body
LE: loop exit
PB: predicated region body
PF: predicated region fallthrough
CT: control target
= control target key end

     0   :  { %7 = vsyncpa [#allocation5], 0  ;;  %s825_s0 = inlined_call_operand.hbm [shape: f32[3], index: 0, kind: input, shape index: {}]   ;;  %s826_s1 = inlined_call_operand.hbm [shape: f32[2,16,256], index: 1, kind: input, shape index: {}]   ;;  %s827_s2 = inlined_call_operand.hbm [shape: f32[2,16,256], index: 2, kind: output, shape index: {}]  }
   0x1   :  { %8 = vsyncpa [#allocation3], 0 }
   0x2   :  { %10 = vsyncpa [#allocation3 + $0x1], 0 }
   0x3   :  { %11 = vsyncpa [#allocation4], 0 }
   0x4   :  { %13 = vsyncpa [#allocation4 + $0x1], 0  ;;  %s607_s9 = smov 0   ;;  %s609_s10 = smov 0  }
   0x5   :  { %s611_s11 = smov 0   ;;  %s613_s12 = smov 0  }
   0x6 LB: > { %s628_s13 = sadd.s32 4294967295, %s583_s12   ;;  %s384_s14 = sadd.s32 4294967294, %s583_s12   ;;  %s583_s12 = sphi %s613_s12, %s847_s12   ;;  %s579_s11 = sphi %s611_s11, %s846_s11   ;;  %s575_s10 = sphi %s609_s10, %s845_s10   ;;  %s571_s9 = sphi %s607_s9, %s844_s9  }
   0x7   : > { %s632_s15 = sadd.s32 1, %s583_s12   ;;  %s47_s16 = sadd.s32 1, %s579_s11 }
   0x8   : > { %s44_s17 = ssub.s32 %s583_s12, %s632_s15  ;;  %p54_p0 = scmp.ne.s32.totalorder %s579_s11, %s575_s10 }
   0x9   : > { %p45_p1 = scmp.eq.s32.totalorder %s44_s17, 0  ;;  %p55_p2 = scmp.eq.s32.totalorder %s583_s12, 0 }
   0xa   : > { %p60_p3 = scmp.ne.s32.totalorder %s575_s10, %s571_s9  ;;  %p828_p4 = scmp.eq.s32.totalorder %s628_s13, 0 }
   0xb   : > { %s644_s18 = scalar_select %p45_p1, %s579_s11, %s47_s16  }
   0xc   : > { %p646_p5 = por %p55_p2, %p54_p0  ;;  %p652_p6 = por %p828_p4, %p60_p3 }
   0xd   : > { %p84_p7 = scmp.eq.s32.totalorder %s628_s13, 1  ;;  %p90_p8 = scmp.eq.s32.totalorder %s384_s14, 1 }
   0xe   : > { %s832_s20 = scalar_select %p652_p6, 1, 0 }
   0xf   : > { %p385_p9 = scmp.ge.s32.totalorder %s583_s12, 1  ;;  %p97_p10 = scmp.lt.s32.totalorder %s583_s12, 3 }
  0x10   : > { %p659_p11 = por %p84_p7, %p54_p0  ;;  %p663_p12 = por %p90_p8, %p60_p3 }
  0x11   : > { %p667_p13 = pnand %p385_p9, %p97_p10  ;;  %p426_p4 = scmp.lt.s32.totalorder %s583_s12, 2 }
  0x12   : > { %s833_s21 = scalar_select %p659_p11, 1, 0 }
  0x13   : > { %s834_s22 = scalar_select %p663_p12, 1, 0 }
  0x14   : > { %p413_p2 = pneg %p667_p13  ;;  %s119_s24 = sand.u32 1, %s579_s11  }
  0x15   : > { %s403_s25 = sshll.u32 %s583_s12, 9  ;;  %p836_p6 = scmp.eq.s32.totalorder %s628_s13, 0 }
  0x16   : > { %p681_p7 = pnand %p426_p4, %p646_p5  ;;  %s388_s27 = sshll.u32 %s119_s24, 5 }
  0x17   : > { %p414_p0 = pnand %p413_p2, %p836_p6  ;;  %s470_s30 = scalar_lea.hbm %s825_s0, 16 }
  0x18   : > { %p471_p3 = scmp.ne.s32.totalorder %s825_s0, %s470_s30  ;;  %p477_p6 = scmp.lt.u32.totalorder %s470_s30, %s825_s0 }
  0x19   : > { %p472_p8 = pneg %p414_p0 }
  0x1b   : > { %p473_p9 = pnand %p472_p8, %p471_p3 }
  0x1d   : > { %p474_p10 = pneg %p473_p9 }
  0x1f   : > { %p479_p4 = pnand %p477_p6, %p474_p10 }
  0x21   : > { %482 = shalt.err (!%p479_p4)
}
  0x22   : > { %s585_s7 = smov [#allocation2]   ;;  %s700_s19 = scalar_lea.hbm %s826_s1, %s403_s25 }
  0x23   : > { %416 = dma.hbm_to_smem (!%p414_p0), %s825_s0, 16, %s585_s7, [#allocation5]  }
  0x24   : > { %s123_s28 = scalar_lea.vmem [#allocation6], %s388_s27  ;;  %s704_s30 = scalar_lea.sflag [#allocation3], %s119_s24 }
  0x25   : > { %s130_s29 = sshll.u32 %s123_s28, 4  ;;  %s483_s3 = scalar_lea.hbm %s700_s19, 512  ;;  %s702_s29 = int_to_ptr.vmem [resolvable:$true] %s130_s29 }
  0x26   : > { %p484_p5 = scmp.ne.s32.totalorder %s700_s19, %s483_s3  ;;  %p485_p2 = pneg %p681_p7 }
  0x27   : > { %s488_s5 = scalar_lea.hbm %s826_s1, 1024  ;;  %p489_p8 = scmp.lt.u32.totalorder %s700_s19, %s826_s1 }
  0x28   : > { %p486_p0 = pnand %p485_p2, %p484_p5  ;;  %p490_p9 = scmp.lt.u32.totalorder %s488_s5, %s483_s3 }
  0x29   : > { %p492_p6 = scmp.lt.u32.totalorder %s483_s3, %s700_s19 }
  0x2a   : > { %p487_p3 = pneg %p486_p0  ;;  %p491_p10 = por %p490_p9, %p489_p8 }
  0x2c   : > { %p493_p4 = por %p492_p6, %p491_p10 }
  0x2e   : > { %p494_p1 = pnand %p493_p4, %p487_p3 }
  0x30   : > { %497 = shalt.err (!%p494_p1)
}
  0x31   : > { %s498_s24 = scalar_lea.vmem %s702_s29, 512  ;;  %s586_s27 = smov [#allocation6]  }
  0x32   : > { %p499_p5 = scmp.ne.s32.totalorder %s702_s29, %s498_s24  ;;  %s503_s8 = sshll.u32 %s586_s27, 4  ;;  %s504_s8 = int_to_ptr.vmem [resolvable:$false] %s503_s8 }
  0x33   : > { %s505_s14 = scalar_lea.vmem %s504_s8, 1024  ;;  %p506_p11 = scmp.lt.s32.totalorder %s702_s29, %s504_s8 }
  0x34   : > { %p501_p0 = pnand %p499_p5, %p485_p2  ;;  %p507_p8 = scmp.lt.s32.totalorder %s505_s14, %s498_s24 }
  0x36   : > { %p502_p12 = pneg %p501_p0  ;;  %p508_p9 = por %p507_p8, %p506_p11 }
  0x38   : > { %p509_p10 = pnand %p508_p9, %p502_p12 }
  0x3a   : > { %512 = shalt.err (!%p509_p10)
}
  0x3b   : > { %s587_s16 = smov 256   ;;  %s588_s17 = smov 16  }
  0x3c   : > { %420 = dma.hbm_to_vmem [thread:$0]  (!%p681_p7), %s700_s19, 512, %s702_s29, %s704_s30, %s587_s16, %s587_s16, %s588_s17  }
  0x3d   : > { %142 = sbr.rel (%p667_p13) target bundleno = 401 (0x191), region = 28  ;;  %p838_p1 = scmp.eq.s32.totalorder (!%p667_p13), %s628_s13, 0 }
  0x44   : > { %558 = dma.done.wait (%p838_p1), [#allocation5], 16   ;;  %p839_p2 = pmov %p838_p1 }
  0x45   : > { %s739_s28 = sand.u32 1, %s575_s10   ;;  %p840_p11 = scmp.ne.s32.totalorder %s832_s20, 0 }
  0x46   : > { %560 = vsyncadd (%p839_p2), [#allocation5], 4294967280  ;;  %s393_s3 = sshll.u32 %s739_s28, 5  ;;  %s149_s25 = scalar_lea.sflag [#allocation3], %s739_s28 }
  0x47   : > { %s152_s26 = scalar_lea.vmem [#allocation6], %s393_s3 }
  0x48   : > { %562 = dma.done.wait (%p840_p11), %s149_s25, 512  }
  0x49   : > { %564 = vsyncadd (%p840_p11), %s149_s25, 4294966784 }
  0x4a   : > { %157 = sfence }
  0x4b   : > { %v749_v0 = vld [vmem:[%s152_s26] sm:$0xff]  ;;  %v751_v1 = vld [vmem:[%s152_s26 + $0x8] sm:$0xff]  ;;  %v753_v2 = vld [vmem:[%s152_s26 + $0x10] sm:$0xff]  ;;  %v186_v6 = vlaneseq  ;;  %s395_s20 = sld [smem:[#allocation2 + $0x1]]  ;;  %s761_s23 = sld [smem:[#allocation2]]  ;;  %vm200_vm0 = vcmask 138312  }
  0x4c   : > { %v178_v3 = vadd.f32 %v751_v1, %v749_v0  ;;  %v757_v4 = vld [vmem:[%s152_s26 + $0x18] sm:$0xff]  ;;  %s763_s19 = sld [smem:[#allocation2 + $0x2]]  ;;  %vm203_vm1 = vcmask 7168   ;;  %vm242_vm4 = vcmask 121912   ;;  %vm247_vm5 = vcmask 121856   ;;  %s173_s29 = scalar_lea.vmem [#allocation7], %s393_s3 }
  0x4d   : > { %v181_v5 = vadd.f32 %v757_v4, %v753_v2  ;;  %v187_v7 = vand.u32 127, %v186_v6  ;;  %v192_v9 = vshrl.u32 %v186_v6, 7  ;;  %vm228_vm8 = vcmask 130112   ;;  %s299_s30 = sshll.u32 %s173_s29, 4  ;;  %s404_s4 = sshll.u32 %s628_s13, 9  ;;  %s774_s30 = int_to_ptr.vmem [resolvable:$true] %s299_s30 }
  0x4e   : > { %179 = vadd.xlane.f32.xlu0 %v178_v3  ;;  %s779_s7 = scalar_lea.hbm %s827_s2, %s404_s4  ;;  %s286_s13 = scalar_lea.sflag [#allocation4], %s739_s28 }
  0x4f   : > { %v190_v8 = vadd.s32 4294967295, %v187_v7  ;;  %v232_v10 = vadd.s32 1, %v187_v7  ;;  %v195_v11 = vadd.s32 4294967287, %v187_v7  ;;  %v237_v12 = vadd.s32 4294967289, %v187_v7  ;;  %s513_s24 = scalar_lea.vmem %s774_s30, 512  ;;  %p841_p13 = scmp.ne.s32.totalorder %s833_s21, 0 }
  0x50   : > { %v223_v14 = vadd.s32 4294967288, %v187_v7  ;;  %v221_v21 = vsub.s32 %v187_v7, %v192_v9  ;;  %v268_v51 = vsub.s32 7, %v192_v9  ;;  %p514_p12 = scmp.ne.s32.totalorder %s774_s30, %s513_s24  ;;  %s589_s27 = smov [#allocation7]  }
  0x51   : > { %v193_v15 = vsub.s32 %v190_v8, %v192_v9  ;;  %v214_v17 = vstv %s395_s20  ;;  %v235_v18 = vsub.s32 %v232_v10, %v192_v9  ;;  %v198_v19 = vsub.s32 %v195_v11, %v192_v9  ;;  %s517_s8 = sshll.u32 %s589_s27, 4  ;;  %s518_s8 = int_to_ptr.vmem [resolvable:$false] %s517_s8 }
  0x52   : > { %182 = vadd.xlane.f32.xlu0 %v181_v5  ;;  %v240_v20 = vsub.s32 %v237_v12, %v192_v9  ;;  %vm205_vm2 = vcmp.ge.s32.totalorder %v190_v8, 0  ;;  %vm206_vm3 = vcmp.lt.s32.totalorder %v190_v8, 16  ;;  %v226_v23 = vsub.s32 %v223_v14, %v192_v9  ;;  %p515_p7 = pnand %p514_p12, %p841_p13  ;;  %s519_s14 = scalar_lea.vmem %s518_s8, 1024 }
  0x53   : > { %vm250_vm6 = vcmp.lt.s32.totalorder %v232_v10, 16  ;;  %vm207_vm7 = vmand %vm205_vm2, %vm206_vm3  ;;  %v210_v32 = vstv %s761_s23  ;;  %v254_v33 = vstv %s763_s19  ;;  %p520_p6 = scmp.lt.s32.totalorder %s774_s30, %s518_s8  ;;  %p521_p4 = scmp.lt.s32.totalorder %s519_s14, %s513_s24 }
  0x54   : > { %p516_p3 = pneg %p515_p7 }
  0x55   : > { %p522_p5 = por %p521_p4, %p520_p6 }
  0x57   : > { %p523_p0 = pnand %p522_p5, %p516_p3 }
  0xdb   : > { %v180_v13 = vpop.xlane.xlu0 %179 }
  0xdc   : > { %v184_v16 = vmul.f32 0.00390625, %v180_v13 }
  0xde   : > { %v194_v25 = vrot.slane %v184_v16, %v193_v15  ;;  %v215_v26 = vmul.f32 %v214_v17, %v184_v16  ;;  %v236_v27 = vrot.slane %v184_v16, %v235_v18  ;;  %v245_v31 = vrot.slane %v184_v16, 7 }
  0xdf   : > { %v183_v22 = vpop.xlane.xlu0 %182 }
  0xe0   : > { %v185_v24 = vmul.f32 0.00390625, %v183_v22  ;;  %v222_v39 = vrot.slane %v215_v26, %v221_v21 }
  0xe2   : > { %v199_v28 = vrot.slane %v185_v24, %v198_v19  ;;  %v216_v29 = vmul.f32 %v214_v17, %v185_v24  ;;  %v241_v30 = vrot.slane %v185_v24, %v240_v20 }
  0xe4   : > { %v201_v34 = vsel %vm200_vm0, %v199_v28, %v194_v25  ;;  %v227_v35 = vrot.slane %v216_v29, %v226_v23  ;;  %v243_v36 = vsel %vm242_vm4, %v241_v30, %v236_v27 }
  0xe5   : > { %v204_v37 = vsel %vm203_vm1, %v185_v24, %v201_v34  ;;  %v248_v38 = vsel %vm247_vm5, %v243_v36, %v245_v31 }
  0xe6   : > { %v209_v40 = vsel %vm207_vm7, %v204_v37, 0.0  ;;  %v253_v41 = vsel %vm250_vm6, %v248_v38, 0.0  ;;  %v229_v44 = vsel %vm228_vm8, %v227_v35, %v222_v39 }
  0xe7   : > { %v211_v42 = vmul.f32 %v210_v32, %v209_v40  ;;  %v255_v43 = vmul.f32 %v254_v33, %v253_v41 }
  0xe9   : > { %v231_v45 = vadd.f32 %v229_v44, %v211_v42  ;;  %v257_v46 = vrot.slane %v255_v43, 2 }
  0xeb   : > { %v259_v47 = vadd.f32 %v257_v46, %v231_v45 }
  0xed   : > { %v397_v48 = vmul.f32 -1.442695, %v259_v47 }
  0xef   : > { %466 = vpow2.f32 %v397_v48 }
  0xf9   : > { %v467_v49 = vpop.eup %466 }
  0xfa   : > { %v263_v50 = vadd.f32 1.0, %v467_v49 }
  0xfc   : > { %468 = vrcp.f32 %v263_v50 }
 0x106   : > { %v469_v52 = vpop.eup %468 }
 0x107   : > { %v269_v53 = vrot.slane %v469_v52, %v268_v51 }
 0x109   : > { %271 = vbcast.lane.b32.xlu1 %v269_v53, 256 }
 0x10d   : > { %275 = vbcast.lane.b32.xlu1 %v269_v53, 264 }
 0x17b   : > { %v272_v54 = vpop.permute.xlu1 %271 }
 0x17c   : > { %v277_v55 = vmul.f32 %v272_v54, %v749_v0  ;;  %v278_v56 = vmul.f32 %v272_v54, %v751_v1 }
 0x17e   : > { %281 = vst [vmem:[%s173_s29] sm:$0xff] %v277_v55  ;;  %282 = vst [vmem:[%s173_s29 + $0x8] sm:$0xff] %v278_v56 }
 0x17f   : > { %v276_v57 = vpop.permute.xlu1 %275 }
 0x180   : > { %v279_v58 = vmul.f32 %v276_v57, %v753_v2  ;;  %v280_v59 = vmul.f32 %v276_v57, %v757_v4 }
 0x182   : > { %283 = vst [vmem:[%s173_s29 + $0x10] sm:$0xff] %v279_v58  ;;  %284 = vst [vmem:[%s173_s29 + $0x18] sm:$0xff] %v280_v59 }
 0x183   : > { %526 = shalt.err (!%p523_p0)
}
 0x184   : > { %s527_s16 = scalar_lea.hbm %s779_s7, 512  ;;  %s531_s25 = scalar_lea.hbm %s827_s2, 1024 }
 0x185   : > { %p528_p8 = scmp.ne.s32.totalorder %s779_s7, %s527_s16  ;;  %p532_p1 = scmp.lt.u32.totalorder %s779_s7, %s827_s2 }
 0x186   : > { %p533_p2 = scmp.lt.u32.totalorder %s531_s25, %s527_s16  ;;  %p535_p12 = scmp.lt.u32.totalorder %s527_s16, %s779_s7 }
 0x187   : > { %p529_p9 = pnand %p528_p8, %p841_p13 }
 0x188   : > { %p534_p11 = por %p533_p2, %p532_p1 }
 0x189   : > { %p530_p10 = pneg %p529_p9 }
 0x18a   : > { %p536_p7 = por %p535_p12, %p534_p11 }
 0x18c   : > { %p537_p3 = pnand %p536_p7, %p530_p10 }
 0x18e   : > { %540 = shalt.err (!%p537_p3)
}
 0x18f   : > { %s590_s23 = smov 256   ;;  %s591_s19 = smov 16  }
 0x190   : > { %411 = dma.vmem_to_hbm [thread:$0]  (%p841_p13), %s774_s30, 512, %s779_s7, %s286_s13, %s590_s23, %s590_s23, %s591_s19  }
 0x191 PF: > { %s314_s29 = sand.u32 1, %s571_s9   ;;  %p842_p6 = scmp.ne.s32.totalorder %s834_s22, 0 }
 0x192   : > { %p843_p4 = scmp.ge.s32.totalorder %s583_s12, 2  ;;  %s315_s4 = scalar_lea.sflag [#allocation4], %s314_s29 }
 0x194   : > { %p422_p5 = pnand %p843_p4, %p842_p6 }
 0x196   : > { %566 = dma.done.wait (!%p422_p5), %s315_s4, 512  }
 0x197   : > { %568 = vsyncadd (!%p422_p5), %s315_s4, 4294966784  ;;  %p16_p0 = scmp.ge.s32.totalorder %s632_s15, 4   ;;  %s844_s9 = smov %s575_s10 }
 0x198   : > { %s845_s10 = smov %s579_s11  ;;  %s846_s11 = smov %s644_s18 }
 0x199   : > { %s847_s12 = smov %s632_s15  ;;  %18 = sbr.rel (!%p16_p0) target bundleno = 6 (0x6), region = 78 }
 0x1a0   :  { %320 = vsyncpa [#allocation3], 1 }
 0x1a1   :  { %322 = vsyncpa [#allocation3 + $0x1], 1 }
 0x1a2   :  { %323 = vsyncpa [#allocation4], 1 }
 0x1a3   :  { %325 = vsyncpa [#allocation4 + $0x1], 1 }
 0x1a4   :  { %326 = vsyncpa [#allocation5], 1 }
 0x1a5   :  { %328 = vsyncpa [#allocation5 + $0x1], 1 }

</bundles_post_ra>
